<compile_context>
chip_gen: v7x
topology: tpu7x:2x2x1
jax: 0.10.0
libtpu: 0.0.40
codegen_flags: <defaults>
</compile_context>

<pallas_src>
import math
import functools

import jax
import jax.numpy as jnp
from jax import lax
from jax.experimental import pallas as pl
from jax.experimental.pallas import tpu as pltpu


def _round_up(x: int, m: int) -> int:
    return ((x + m - 1) // m) * m


def _cross_attention_kernel(x_ref,
                            wq_ref, bq_ref,
                            wk_ref, bk_ref,
                            wv_ref, bv_ref,
                            wo_ref, bo_ref,
                            o_ref,
                            kT_scr, v_scr,
                            *, n_heads: int, d_head: int,
                            q_tile: int, seq_len: int):
    """Fused per-(batch, q-tile) cross-attention.

    x_ref   : (S_pad, D)  activations for this batch element (compute dtype)
    wq/wk/wv/wo : (D, D)  dense, pre-transposed (in, out) weights (compute dtype)
    bq/bv/bo: (1, D) f32  row biases (scale folded into wq/bq)
    bk      : (D, 1) f32  column bias (K is produced transposed)
    o_ref   : (Tq, D)     output tile
    kT_scr  : VMEM (D, S_pad)  K^T cache, recomputed when q-tile index == 0
    v_scr   : VMEM (S_pad, D)  V cache,   recomputed when q-tile index == 0

    NOTE: correctness of the K/V-cache-at-qi==0 scheme relies on the q-tile grid
    axis iterating in order on a single core: grid=(bs, n_q) with
    dimension_semantics=("parallel", "arbitrary").  Do not reorder the grid.
    """
    qi = pl.program_id(1)
    s_pad = x_ref.shape[0]
    d_embed = x_ref.shape[1]

    # --- K/V projections: one dense matmul each, once per batch element. -----
    @pl.when(qi == 0)
    def _():
        x_kv = x_ref[...]                                           # (S_pad, D)
        # K^T = Wk^T @ x^T, produced directly in (D, S_pad) layout by
        # contracting D on both operands (hoists the relayout to once/batch).
        k_t = lax.dot_general(wk_ref[...], x_kv, (((0,), (1,)), ((), ())),
                              preferred_element_type=jnp.float32)   # (D, S_pad)
        kT_scr[...] = (k_t + bk_ref[...]).astype(kT_scr.dtype)
        v = jnp.dot(x_kv, wv_ref[...],
                    preferred_element_type=jnp.float32) + bv_ref[...]
        v_scr[...] = v.astype(v_scr.dtype)

    # --- Q projection: one dense matmul on the query tile. -------------------
    start = pl.multiple_of(qi * q_tile, q_tile)
    x_q = x_ref[pl.ds(start, q_tile), :]                            # (Tq, D)
    q = (jnp.dot(x_q, wq_ref[...], preferred_element_type=jnp.float32)
         + bq_ref[...]).astype(x_q.dtype)                           # (Tq, D)

    # Key mask for padded sequence positions (static: only emitted if padded).
    if s_pad > seq_len:
        key_mask = lax.broadcasted_iota(jnp.int32, (q_tile, s_pad), 1) < seq_len
    else:
        key_mask = None

    # --- Per-head attention (H is small; unrolled Python loop). --------------
    head_outs = []
    for h in range(n_heads):
        lo, hi = h * d_head, (h + 1) * d_head
        q_h = q[:, lo:hi]                                           # (Tq, dh)
        k_t_h = kT_scr[lo:hi, :]                                    # (dh, S_pad)
        s = jnp.dot(q_h, k_t_h, preferred_element_type=jnp.float32)  # (Tq, S_pad)
        if key_mask is not None:
            s = jnp.where(key_mask, s, -1e30)
        # numerically stable, UN-normalized softmax
        s = s - jnp.max(s, axis=-1, keepdims=True)
        p = jnp.exp(s)
        l = jnp.sum(p, axis=-1, keepdims=True)                      # (Tq, 1) f32
        head_out = jnp.dot(p.astype(v_scr.dtype), v_scr[:, lo:hi],
                           preferred_element_type=jnp.float32)      # (Tq, dh)
        # normalize after PV: (Tq, dh) multiply instead of (Tq, S) multiply
        head_out = head_out * pl.reciprocal(l, approx=True)
        head_outs.append(head_out.astype(wo_ref.dtype))

    attn = head_outs[0] if n_heads == 1 else jnp.concatenate(head_outs, axis=-1)

    # --- Output projection: one dense (Tq, D) @ (D, D) matmul. ---------------
    out = jnp.dot(attn, wo_ref[...],
                  preferred_element_type=jnp.float32) + bo_ref[...]
    o_ref[...] = out.astype(o_ref.dtype)
    del d_embed


def cross_attention(x, y, params, *, n_heads: int,
                    q_tile: int | None = None,
                    compute_dtype=jnp.bfloat16):
    """JAX wrapper.  `y` is accepted for signature parity but (as in the
    reference forward) is unused — k/v are computed from x."""
    del y  # unused by the reference forward
    bs, seq_len, d_embed = x.shape
    assert d_embed % n_heads == 0
    d_head = d_embed // n_heads
    scale = 1.0 / math.sqrt(d_head)

    # q-tile / sequence padding: keep the 128/256-tile path for ragged S
    # instead of collapsing to a single (S, S) tile.
    q_tile_target = 256 if q_tile is None else q_tile
    q_tile_target = _round_up(q_tile_target, 8)
    if seq_len <= q_tile_target:
        q_tile_eff = _round_up(seq_len, 8)
        s_pad = q_tile_eff
    else:
        q_tile_eff = q_tile_target
        s_pad = _round_up(seq_len, q_tile_eff)
    n_q = s_pad // q_tile_eff

    wq, bq = params["q_proj"]
    wk, bk = params["k_proj"]
    wv, bv = params["v_proj"]
    wo, bo = params["out_proj"]

    # Dense, pre-transposed (in, out) weights; 1/sqrt(d_head) folded into Wq/bq.
    wq_t = (wq.T * scale).astype(compute_dtype)                 # (D, D)
    wk_t = wk.T.astype(compute_dtype)                           # (D, D)
    wv_t = wv.T.astype(compute_dtype)                           # (D, D)
    wo_t = wo.T.astype(compute_dtype)                           # (D, D)
    bq_r = (bq * scale).reshape(1, d_embed).astype(jnp.float32)
    bk_c = bk.reshape(d_embed, 1).astype(jnp.float32)           # column: K is (D, S)
    bv_r = bv.reshape(1, d_embed).astype(jnp.float32)
    bo_r = bo.reshape(1, d_embed).astype(jnp.float32)

    x_c = x.astype(compute_dtype)
    if s_pad > seq_len:
        x_c = jnp.pad(x_c, ((0, 0), (0, s_pad - seq_len), (0, 0)))

    kernel = functools.partial(_cross_attention_kernel,
                               n_heads=n_heads, d_head=d_head,
                               q_tile=q_tile_eff, seq_len=seq_len)

    x_spec = pl.BlockSpec((None, s_pad, d_embed), lambda b, qi: (b, 0, 0))
    w_spec = pl.BlockSpec((d_embed, d_embed), lambda b, qi: (0, 0))
    b_row_spec = pl.BlockSpec((1, d_embed), lambda b, qi: (0, 0))
    b_col_spec = pl.BlockSpec((d_embed, 1), lambda b, qi: (0, 0))
    out_spec = pl.BlockSpec((None, q_tile_eff, d_embed), lambda b, qi: (b, qi, 0))

    # VMEM budget: derive from actual block/scratch footprint (double-buffered
    # pipeline blocks + scratch), with headroom, capped at the v7x 64 MiB
    # physical per-core ceiling.
    cd_bytes = jnp.dtype(compute_dtype).itemsize
    out_bytes = jnp.dtype(x.dtype).itemsize
    blocks = (s_pad * d_embed * cd_bytes                 # x block
              + q_tile_eff * d_embed * out_bytes         # out block
              + 4 * d_embed * d_embed * cd_bytes         # wq/wk/wv/wo
              + 4 * d_embed * 4)                         # biases (f32)
    scratch = 2 * s_pad * d_embed * cd_bytes             # K^T + V caches
    vmem_need = 2 * blocks + scratch
    vmem_limit = int(min(max(2 * vmem_need, 32 * 1024 * 1024), 64 * 1024 * 1024))

    out = pl.pallas_call(
        kernel,
        out_shape=jax.ShapeDtypeStruct((bs, s_pad, d_embed), x.dtype),
        grid_spec=pltpu.PrefetchScalarGridSpec(
            num_scalar_prefetch=0,
            grid=(bs, n_q),
            in_specs=[x_spec,
                      w_spec, b_row_spec,    # q_proj
                      w_spec, b_col_spec,    # k_proj (K stored transposed)
                      w_spec, b_row_spec,    # v_proj
                      w_spec, b_row_spec],   # out_proj
            out_specs=out_spec,
            scratch_shapes=[
                # K^T / V caches, recomputed at q-tile index 0 of each batch
                # element; requires the q-tile axis to be ordered ("arbitrary").
                pltpu.VMEM((d_embed, s_pad), compute_dtype),
                pltpu.VMEM((s_pad, d_embed), compute_dtype),
            ],
        ),
        compiler_params=pltpu.CompilerParams(
            dimension_semantics=("parallel", "arbitrary"),
            vmem_limit_bytes=vmem_limit,
        ),
    )(x_c, wq_t, bq_r, wk_t, bk_c, wv_t, bv_r, wo_t, bo_r)

    if s_pad > seq_len:
        out = out[:, :seq_len, :]
    return out


def _reference(x, params, n_heads):
    """Pure-JAX f32 reference mirroring the PyTorch forward exactly."""
    bs, seq_len, d_embed = x.shape
    d_head = d_embed // n_heads
    wq, bq = params["q_proj"]
    wk, bk = params["k_proj"]
    wv, bv = params["v_proj"]
    wo, bo = params["out_proj"]

    q = x @ wq.T + bq
    k = x @ wk.T + bk
    v = x @ wv.T + bv
    q = q.reshape(bs, seq_len, n_heads, d_head).transpose(0, 2, 1, 3)
    k = k.reshape(bs, seq_len, n_heads, d_head).transpose(0, 2, 1, 3)
    v = v.reshape(bs, seq_len, n_heads, d_head).transpose(0, 2, 1, 3)
    wei = jnp.einsum("bhqd,bhkd->bhqk", q, k) / math.sqrt(d_head)
    wei = jax.nn.softmax(wei, axis=-1)
    out = jnp.einsum("bhqk,bhkd->bhqd", wei, v)
    out = out.transpose(0, 2, 1, 3).reshape(bs, seq_len, d_embed)
    return out @ wo.T + bo


if __name__ == "__main__":
    # Small shapes consistent with the module.  d_cross must equal d_embed for
    # the reference forward (k_proj/v_proj are applied to x) to shape-check.
    n_heads = 4
    d_embed = 32
    d_cross = 32
    bs, seq_len = 2, 16
    seq_cross = 8

    key = jax.random.PRNGKey(0)
    ks = jax.random.split(key, 10)

    def linear_init(kw, kb, out_dim, in_dim):
        bound = 1.0 / math.sqrt(in_dim)
        w = jax.random.uniform(kw, (out_dim, in_dim), jnp.float32, -bound, bound)
        b = jax.random.uniform(kb, (out_dim,), jnp.float32, -bound, bound)
        return w, b

    params = {
        "q_proj":   linear_init(ks[0], ks[1], d_embed, d_embed),
        "k_proj":   linear_init(ks[2], ks[3], d_embed, d_cross),
        "v_proj":   linear_init(ks[4], ks[5], d_embed, d_cross),
        "out_proj": linear_init(ks[6], ks[7], d_embed, d_embed),
    }

    x = jax.random.normal(ks[8], (bs, seq_len, d_embed), jnp.float32)
    y = jax.random.normal(ks[9], (bs, seq_cross, d_cross), jnp.float32)  # unused by forward

    out = cross_attention(x, y, params, n_heads=n_heads)
    out = jax.block_until_ready(out)

    ref = _reference(x, params, n_heads)
    assert out.shape == (bs, seq_len, d_embed)
    # bf16 matmul inputs (f32 accumulation) + approximate reciprocal -> loose tol.
    assert jnp.allclose(out, ref, atol=2e-2, rtol=2e-2), \
        f"max abs err {jnp.max(jnp.abs(out - ref))}"

    print("KERNEL_OK")
</pallas_src>

<mosaic_0001>
module attributes {stable_mosaic.version = 11 : i64} {
  func.func @_cross_attention_kernel(%arg0: i32, %arg1: i32, %arg2: memref<1x16x32xbf16, #tpu.memory_space<vmem>>, %arg3: memref<32x32xbf16, #tpu.memory_space<vmem>>, %arg4: memref<1x32xf32, #tpu.memory_space<vmem>>, %arg5: memref<32x32xbf16, #tpu.memory_space<vmem>>, %arg6: memref<32x1xf32, #tpu.memory_space<vmem>>, %arg7: memref<32x32xbf16, #tpu.memory_space<vmem>>, %arg8: memref<1x32xf32, #tpu.memory_space<vmem>>, %arg9: memref<32x32xbf16, #tpu.memory_space<vmem>>, %arg10: memref<1x32xf32, #tpu.memory_space<vmem>>, %arg11: memref<1x16x32xf32, #tpu.memory_space<vmem>>, %arg12: memref<32x16xbf16, #tpu.memory_space<vmem>>, %arg13: memref<16x32xbf16, #tpu.memory_space<vmem>>) attributes {dimension_semantics = [#tpu.dimension_semantics<parallel>, #tpu.dimension_semantics<arbitrary>], iteration_bounds = array<i64: 2, 1>, scalar_prefetch = 0 : i64, scratch_operands = 2 : i64, tpu.core_type = #tpu.core_type<tc>, window_params = [{transform_indices = @transform_0, window_bounds = array<i64: 1, 16, 32>}, {pipeline_mode = #tpu.pipeline_mode<synchronous>, transform_indices = @transform_1, window_bounds = array<i64: 32, 32>}, {pipeline_mode = #tpu.pipeline_mode<synchronous>, transform_indices = @transform_2, window_bounds = array<i64: 1, 32>}, {pipeline_mode = #tpu.pipeline_mode<synchronous>, transform_indices = @transform_3, window_bounds = array<i64: 32, 32>}, {pipeline_mode = #tpu.pipeline_mode<synchronous>, transform_indices = @transform_4, window_bounds = array<i64: 32, 1>}, {pipeline_mode = #tpu.pipeline_mode<synchronous>, transform_indices = @transform_5, window_bounds = array<i64: 32, 32>}, {pipeline_mode = #tpu.pipeline_mode<synchronous>, transform_indices = @transform_6, window_bounds = array<i64: 1, 32>}, {pipeline_mode = #tpu.pipeline_mode<synchronous>, transform_indices = @transform_7, window_bounds = array<i64: 32, 32>}, {pipeline_mode = #tpu.pipeline_mode<synchronous>, transform_indices = @transform_8, window_bounds = array<i64: 1, 32>}, {transform_indices = @transform_9, window_bounds = array<i64: 1, 16, 32>}]} {
    %c0_i32 = arith.constant 0 : i32
    %0 = arith.cmpi eq, %arg1, %c0_i32 : i32
    %1 = arith.extui %0 : i1 to i32
    %c0_i32_0 = arith.constant 0 : i32
    %2 = arith.cmpi ne, %1, %c0_i32_0 : i32
    scf.if %2 {
      %c0_43 = arith.constant 0 : index
      %c0_44 = arith.constant 0 : index
      %c0_45 = arith.constant 0 : index
      %91 = vector.load %arg2[%c0_43, %c0_44, %c0_45] : memref<1x16x32xbf16, #tpu.memory_space<vmem>>, vector<1x16x32xbf16>
      %92 = vector.shape_cast %91 : vector<1x16x32xbf16> to vector<16x32xbf16>
      %c0_46 = arith.constant 0 : index
      %c0_47 = arith.constant 0 : index
      %93 = vector.load %arg5[%c0_46, %c0_47] : memref<32x32xbf16, #tpu.memory_space<vmem>>, vector<32x32xbf16>
      %cst_48 = arith.constant dense<0.000000e+00> : vector<32x16xf32>
      %94 = tpu.matmul %93, %92, %cst_48 {dimension_numbers = #tpu.dot_dimension_numbers<[0], [1], [1], [0], [0, 1, 1, 0], [], []>} : vector<32x32xbf16>, vector<16x32xbf16>, vector<32x16xf32> -> vector<32x16xf32>
      %c0_49 = arith.constant 0 : index
      %c0_50 = arith.constant 0 : index
      %95 = vector.load %arg6[%c0_49, %c0_50] : memref<32x1xf32, #tpu.memory_space<vmem>>, vector<32x1xf32>
      %96 = vector.broadcast %95 : vector<32x1xf32> to vector<32x16xf32>
      %97 = arith.addf %94, %96 : vector<32x16xf32>
      %98 = arith.truncf %97 : vector<32x16xf32> to vector<32x16xbf16>
      %c0_51 = arith.constant 0 : index
      %c0_52 = arith.constant 0 : index
      %99 = vector.load %arg12[%c0_51, %c0_52] : memref<32x16xbf16, #tpu.memory_space<vmem>>, vector<32x16xbf16>
      tpu.vector_store %arg12[%c0_51, %c0_52], %98 {strides = array<i32>} : memref<32x16xbf16, #tpu.memory_space<vmem>>, vector<32x16xbf16>,
      %c0_53 = arith.constant 0 : index
      %c0_54 = arith.constant 0 : index
      %100 = vector.load %arg7[%c0_53, %c0_54] : memref<32x32xbf16, #tpu.memory_space<vmem>>, vector<32x32xbf16>
      %cst_55 = arith.constant dense<0.000000e+00> : vector<16x32xf32>
      %101 = tpu.matmul %92, %100, %cst_55 {dimension_numbers = #tpu.dot_dimension_numbers<[1], [0], [0], [1], [0, 0, 1, 1], [], []>} : vector<16x32xbf16>, vector<32x32xbf16>, vector<16x32xf32> -> vector<16x32xf32>
      %c0_56 = arith.constant 0 : index
      %c0_57 = arith.constant 0 : index
      %102 = vector.load %arg8[%c0_56, %c0_57] : memref<1x32xf32, #tpu.memory_space<vmem>>, vector<1x32xf32>
      %103 = vector.broadcast %102 : vector<1x32xf32> to vector<16x32xf32>
      %104 = arith.addf %101, %103 : vector<16x32xf32>
      %105 = arith.truncf %104 : vector<16x32xf32> to vector<16x32xbf16>
      %c0_58 = arith.constant 0 : index
      %c0_59 = arith.constant 0 : index
      %106 = vector.load %arg13[%c0_58, %c0_59] : memref<16x32xbf16, #tpu.memory_space<vmem>>, vector<16x32xbf16>
      tpu.vector_store %arg13[%c0_58, %c0_59], %105 {strides = array<i32>} : memref<16x32xbf16, #tpu.memory_space<vmem>>, vector<16x32xbf16>,
    } else {
    }
    %c16_i32 = arith.constant 16 : i32
    %3 = arith.muli %arg1, %c16_i32 : i32
    %4 = tpu.assume_multiple %3, 16 : i32
    %c0 = arith.constant 0 : index
    %5 = arith.index_cast %4 : i32 to index
    %c0_1 = arith.constant 0 : index
    %6 = vector.load %arg2[%c0, %5, %c0_1] : memref<1x16x32xbf16, #tpu.memory_space<vmem>>, vector<1x16x32xbf16>
    %7 = vector.shape_cast %6 : vector<1x16x32xbf16> to vector<16x32xbf16>
    %c0_2 = arith.constant 0 : index
    %c0_3 = arith.constant 0 : index
    %8 = vector.load %arg3[%c0_2, %c0_3] : memref<32x32xbf16, #tpu.memory_space<vmem>>, vector<32x32xbf16>
    %cst = arith.constant dense<0.000000e+00> : vector<16x32xf32>
    %9 = tpu.matmul %7, %8, %cst {dimension_numbers = #tpu.dot_dimension_numbers<[1], [0], [0], [1], [0, 0, 1, 1], [], []>} : vector<16x32xbf16>, vector<32x32xbf16>, vector<16x32xf32> -> vector<16x32xf32>
    %c0_4 = arith.constant 0 : index
    %c0_5 = arith.constant 0 : index
    %10 = vector.load %arg4[%c0_4, %c0_5] : memref<1x32xf32, #tpu.memory_space<vmem>>, vector<1x32xf32>
    %11 = vector.broadcast %10 : vector<1x32xf32> to vector<16x32xf32>
    %12 = arith.addf %9, %11 : vector<16x32xf32>
    %13 = arith.truncf %12 : vector<16x32xf32> to vector<16x32xbf16>
    %14 = vector.extract_strided_slice %13 {offsets = [0, 0], sizes = [16, 8], strides = [1, 1]} : vector<16x32xbf16> to vector<16x8xbf16>
    %c0_6 = arith.constant 0 : index
    %c0_7 = arith.constant 0 : index
    %15 = vector.load %arg12[%c0_6, %c0_7] : memref<32x16xbf16, #tpu.memory_space<vmem>>, vector<8x16xbf16>
    %cst_8 = arith.constant dense<0.000000e+00> : vector<16x16xf32>
    %16 = tpu.matmul %14, %15, %cst_8 {dimension_numbers = #tpu.dot_dimension_numbers<[1], [0], [0], [1], [0, 0, 1, 1], [], []>} : vector<16x8xbf16>, vector<8x16xbf16>, vector<16x16xf32> -> vector<16x16xf32>
    %cst_9 = arith.constant dense<0xFF800000> : vector<16xf32>
    %17 = vector.multi_reduction <maximumf>, %16, %cst_9 [1] : vector<16x16xf32> to vector<16xf32>
    %18 = vector.shape_cast %17 : vector<16xf32> to vector<16x1xf32>
    %19 = vector.broadcast %18 : vector<16x1xf32> to vector<16x16xf32>
    %20 = arith.subf %16, %19 : vector<16x16xf32>
    %21 = math.exp %20 : vector<16x16xf32>
    %cst_10 = arith.constant dense<0.000000e+00> : vector<16xf32>
    %22 = vector.multi_reduction <add>, %21, %cst_10 [1] : vector<16x16xf32> to vector<16xf32>
    %23 = vector.shape_cast %22 : vector<16xf32> to vector<16x1xf32>
    %24 = arith.truncf %21 : vector<16x16xf32> to vector<16x16xbf16>
    %c0_11 = arith.constant 0 : index
    %c0_12 = arith.constant 0 : index
    %25 = vector.load %arg13[%c0_11, %c0_12] : memref<16x32xbf16, #tpu.memory_space<vmem>>, vector<16x8xbf16>
    %cst_13 = arith.constant dense<0.000000e+00> : vector<16x8xf32>
    %26 = tpu.matmul %24, %25, %cst_13 {dimension_numbers = #tpu.dot_dimension_numbers<[1], [0], [0], [1], [0, 0, 1, 1], [], []>} : vector<16x16xbf16>, vector<16x8xbf16>, vector<16x8xf32> -> vector<16x8xf32>
    %27 = tpu.reciprocal %23 {approx = true} : vector<16x1xf32> -> vector<16x1xf32>
    %28 = vector.broadcast %27 : vector<16x1xf32> to vector<16x8xf32>
    %29 = arith.mulf %26, %28 : vector<16x8xf32>
    %30 = arith.truncf %29 : vector<16x8xf32> to vector<16x8xbf16>
    %31 = vector.extract_strided_slice %13 {offsets = [0, 8], sizes = [16, 8], strides = [1, 1]} : vector<16x32xbf16> to vector<16x8xbf16>
    %c8 = arith.constant 8 : index
    %c0_14 = arith.constant 0 : index
    %32 = vector.load %arg12[%c8, %c0_14] : memref<32x16xbf16, #tpu.memory_space<vmem>>, vector<8x16xbf16>
    %cst_15 = arith.constant dense<0.000000e+00> : vector<16x16xf32>
    %33 = tpu.matmul %31, %32, %cst_15 {dimension_numbers = #tpu.dot_dimension_numbers<[1], [0], [0], [1], [0, 0, 1, 1], [], []>} : vector<16x8xbf16>, vector<8x16xbf16>, vector<16x16xf32> -> vector<16x16xf32>
    %cst_16 = arith.constant dense<0xFF800000> : vector<16xf32>
    %34 = vector.multi_reduction <maximumf>, %33, %cst_16 [1] : vector<16x16xf32> to vector<16xf32>
    %35 = vector.shape_cast %34 : vector<16xf32> to vector<16x1xf32>
    %36 = vector.broadcast %35 : vector<16x1xf32> to vector<16x16xf32>
    %37 = arith.subf %33, %36 : vector<16x16xf32>
    %38 = math.exp %37 : vector<16x16xf32>
    %cst_17 = arith.constant dense<0.000000e+00> : vector<16xf32>
    %39 = vector.multi_reduction <add>, %38, %cst_17 [1] : vector<16x16xf32> to vector<16xf32>
    %40 = vector.shape_cast %39 : vector<16xf32> to vector<16x1xf32>
    %41 = arith.truncf %38 : vector<16x16xf32> to vector<16x16xbf16>
    %c0_18 = arith.constant 0 : index
    %c8_19 = arith.constant 8 : index
    %42 = vector.load %arg13[%c0_18, %c8_19] : memref<16x32xbf16, #tpu.memory_space<vmem>>, vector<16x8xbf16>
    %cst_20 = arith.constant dense<0.000000e+00> : vector<16x8xf32>
    %43 = tpu.matmul %41, %42, %cst_20 {dimension_numbers = #tpu.dot_dimension_numbers<[1], [0], [0], [1], [0, 0, 1, 1], [], []>} : vector<16x16xbf16>, vector<16x8xbf16>, vector<16x8xf32> -> vector<16x8xf32>
    %44 = tpu.reciprocal %40 {approx = true} : vector<16x1xf32> -> vector<16x1xf32>
    %45 = vector.broadcast %44 : vector<16x1xf32> to vector<16x8xf32>
    %46 = arith.mulf %43, %45 : vector<16x8xf32>
    %47 = arith.truncf %46 : vector<16x8xf32> to vector<16x8xbf16>
    %48 = vector.extract_strided_slice %13 {offsets = [0, 16], sizes = [16, 8], strides = [1, 1]} : vector<16x32xbf16> to vector<16x8xbf16>
    %c16 = arith.constant 16 : index
    %c0_21 = arith.constant 0 : index
    %49 = vector.load %arg12[%c16, %c0_21] : memref<32x16xbf16, #tpu.memory_space<vmem>>, vector<8x16xbf16>
    %cst_22 = arith.constant dense<0.000000e+00> : vector<16x16xf32>
    %50 = tpu.matmul %48, %49, %cst_22 {dimension_numbers = #tpu.dot_dimension_numbers<[1], [0], [0], [1], [0, 0, 1, 1], [], []>} : vector<16x8xbf16>, vector<8x16xbf16>, vector<16x16xf32> -> vector<16x16xf32>
    %cst_23 = arith.constant dense<0xFF800000> : vector<16xf32>
    %51 = vector.multi_reduction <maximumf>, %50, %cst_23 [1] : vector<16x16xf32> to vector<16xf32>
    %52 = vector.shape_cast %51 : vector<16xf32> to vector<16x1xf32>
    %53 = vector.broadcast %52 : vector<16x1xf32> to vector<16x16xf32>
    %54 = arith.subf %50, %53 : vector<16x16xf32>
    %55 = math.exp %54 : vector<16x16xf32>
    %cst_24 = arith.constant dense<0.000000e+00> : vector<16xf32>
    %56 = vector.multi_reduction <add>, %55, %cst_24 [1] : vector<16x16xf32> to vector<16xf32>
    %57 = vector.shape_cast %56 : vector<16xf32> to vector<16x1xf32>
    %58 = arith.truncf %55 : vector<16x16xf32> to vector<16x16xbf16>
    %c0_25 = arith.constant 0 : index
    %c16_26 = arith.constant 16 : index
    %59 = vector.load %arg13[%c0_25, %c16_26] : memref<16x32xbf16, #tpu.memory_space<vmem>>, vector<16x8xbf16>
    %cst_27 = arith.constant dense<0.000000e+00> : vector<16x8xf32>
    %60 = tpu.matmul %58, %59, %cst_27 {dimension_numbers = #tpu.dot_dimension_numbers<[1], [0], [0], [1], [0, 0, 1, 1], [], []>} : vector<16x16xbf16>, vector<16x8xbf16>, vector<16x8xf32> -> vector<16x8xf32>
    %61 = tpu.reciprocal %57 {approx = true} : vector<16x1xf32> -> vector<16x1xf32>
    %62 = vector.broadcast %61 : vector<16x1xf32> to vector<16x8xf32>
    %63 = arith.mulf %60, %62 : vector<16x8xf32>
    %64 = arith.truncf %63 : vector<16x8xf32> to vector<16x8xbf16>
    %65 = vector.extract_strided_slice %13 {offsets = [0, 24], sizes = [16, 8], strides = [1, 1]} : vector<16x32xbf16> to vector<16x8xbf16>
    %c24 = arith.constant 24 : index
    %c0_28 = arith.constant 0 : index
    %66 = vector.load %arg12[%c24, %c0_28] : memref<32x16xbf16, #tpu.memory_space<vmem>>, vector<8x16xbf16>
    %cst_29 = arith.constant dense<0.000000e+00> : vector<16x16xf32>
    %67 = tpu.matmul %65, %66, %cst_29 {dimension_numbers = #tpu.dot_dimension_numbers<[1], [0], [0], [1], [0, 0, 1, 1], [], []>} : vector<16x8xbf16>, vector<8x16xbf16>, vector<16x16xf32> -> vector<16x16xf32>
    %cst_30 = arith.constant dense<0xFF800000> : vector<16xf32>
    %68 = vector.multi_reduction <maximumf>, %67, %cst_30 [1] : vector<16x16xf32> to vector<16xf32>
    %69 = vector.shape_cast %68 : vector<16xf32> to vector<16x1xf32>
    %70 = vector.broadcast %69 : vector<16x1xf32> to vector<16x16xf32>
    %71 = arith.subf %67, %70 : vector<16x16xf32>
    %72 = math.exp %71 : vector<16x16xf32>
    %cst_31 = arith.constant dense<0.000000e+00> : vector<16xf32>
    %73 = vector.multi_reduction <add>, %72, %cst_31 [1] : vector<16x16xf32> to vector<16xf32>
    %74 = vector.shape_cast %73 : vector<16xf32> to vector<16x1xf32>
    %75 = arith.truncf %72 : vector<16x16xf32> to vector<16x16xbf16>
    %c0_32 = arith.constant 0 : index
    %c24_33 = arith.constant 24 : index
    %76 = vector.load %arg13[%c0_32, %c24_33] : memref<16x32xbf16, #tpu.memory_space<vmem>>, vector<16x8xbf16>
    %cst_34 = arith.constant dense<0.000000e+00> : vector<16x8xf32>
    %77 = tpu.matmul %75, %76, %cst_34 {dimension_numbers = #tpu.dot_dimension_numbers<[1], [0], [0], [1], [0, 0, 1, 1], [], []>} : vector<16x16xbf16>, vector<16x8xbf16>, vector<16x8xf32> -> vector<16x8xf32>
    %78 = tpu.reciprocal %74 {approx = true} : vector<16x1xf32> -> vector<16x1xf32>
    %79 = vector.broadcast %78 : vector<16x1xf32> to vector<16x8xf32>
    %80 = arith.mulf %77, %79 : vector<16x8xf32>
    %81 = arith.truncf %80 : vector<16x8xf32> to vector<16x8xbf16>
    %82 = tpu.concatenate %30, %47, %64, %81 in 1 : vector<16x8xbf16>, vector<16x8xbf16>, vector<16x8xbf16>, vector<16x8xbf16> -> vector<16x32xbf16>
    %c0_35 = arith.constant 0 : index
    %c0_36 = arith.constant 0 : index
    %83 = vector.load %arg9[%c0_35, %c0_36] : memref<32x32xbf16, #tpu.memory_space<vmem>>, vector<32x32xbf16>
    %cst_37 = arith.constant dense<0.000000e+00> : vector<16x32xf32>
    %84 = tpu.matmul %82, %83, %cst_37 {dimension_numbers = #tpu.dot_dimension_numbers<[1], [0], [0], [1], [0, 0, 1, 1], [], []>} : vector<16x32xbf16>, vector<32x32xbf16>, vector<16x32xf32> -> vector<16x32xf32>
    %c0_38 = arith.constant 0 : index
    %c0_39 = arith.constant 0 : index
    %85 = vector.load %arg10[%c0_38, %c0_39] : memref<1x32xf32, #tpu.memory_space<vmem>>, vector<1x32xf32>
    %86 = vector.broadcast %85 : vector<1x32xf32> to vector<16x32xf32>
    %87 = arith.addf %84, %86 : vector<16x32xf32>
    %c0_40 = arith.constant 0 : index
    %c0_41 = arith.constant 0 : index
    %c0_42 = arith.constant 0 : index
    %88 = vector.load %arg11[%c0_40, %c0_41, %c0_42] : memref<1x16x32xf32, #tpu.memory_space<vmem>>, vector<1x16x32xf32>
    %89 = vector.shape_cast %88 : vector<1x16x32xf32> to vector<16x32xf32>
    %90 = vector.shape_cast %87 : vector<16x32xf32> to vector<1x16x32xf32>
    tpu.vector_store %arg11[%c0_40, %c0_41, %c0_42], %90 {strides = array<i32>} : memref<1x16x32xf32, #tpu.memory_space<vmem>>, vector<1x16x32xf32>,
    return
  }
  func.func @transform_0(%arg0: i32, %arg1: i32) -> (i32, i32, i32) {
    %c0_i32 = arith.constant 0 : i32
    %c0_i32_0 = arith.constant 0 : i32
    %c0_i32_1 = arith.constant 0 : i32
    return %arg0, %c0_i32, %c0_i32_0 : i32, i32, i32
  }
  func.func @transform_1(%arg0: i32, %arg1: i32) -> (i32, i32) {
    %c0_i32 = arith.constant 0 : i32
    %c0_i32_0 = arith.constant 0 : i32
    %c0_i32_1 = arith.constant 0 : i32
    return %c0_i32, %c0_i32_0 : i32, i32
  }
  func.func @transform_2(%arg0: i32, %arg1: i32) -> (i32, i32) {
    %c0_i32 = arith.constant 0 : i32
    %c0_i32_0 = arith.constant 0 : i32
    %c0_i32_1 = arith.constant 0 : i32
    return %c0_i32, %c0_i32_0 : i32, i32
  }
  func.func @transform_3(%arg0: i32, %arg1: i32) -> (i32, i32) {
    %c0_i32 = arith.constant 0 : i32
    %c0_i32_0 = arith.constant 0 : i32
    %c0_i32_1 = arith.constant 0 : i32
    return %c0_i32, %c0_i32_0 : i32, i32
  }
  func.func @transform_4(%arg0: i32, %arg1: i32) -> (i32, i32) {
    %c0_i32 = arith.constant 0 : i32
    %c0_i32_0 = arith.constant 0 : i32
    %c0_i32_1 = arith.constant 0 : i32
    return %c0_i32, %c0_i32_0 : i32, i32
  }
  func.func @transform_5(%arg0: i32, %arg1: i32) -> (i32, i32) {
    %c0_i32 = arith.constant 0 : i32
    %c0_i32_0 = arith.constant 0 : i32
    %c0_i32_1 = arith.constant 0 : i32
    return %c0_i32, %c0_i32_0 : i32, i32
  }
  func.func @transform_6(%arg0: i32, %arg1: i32) -> (i32, i32) {
    %c0_i32 = arith.constant 0 : i32
    %c0_i32_0 = arith.constant 0 : i32
    %c0_i32_1 = arith.constant 0 : i32
    return %c0_i32, %c0_i32_0 : i32, i32
  }
  func.func @transform_7(%arg0: i32, %arg1: i32) -> (i32, i32) {
    %c0_i32 = arith.constant 0 : i32
    %c0_i32_0 = arith.constant 0 : i32
    %c0_i32_1 = arith.constant 0 : i32
    return %c0_i32, %c0_i32_0 : i32, i32
  }
  func.func @transform_8(%arg0: i32, %arg1: i32) -> (i32, i32) {
    %c0_i32 = arith.constant 0 : i32
    %c0_i32_0 = arith.constant 0 : i32
    %c0_i32_1 = arith.constant 0 : i32
    return %c0_i32, %c0_i32_0 : i32, i32
  }
  func.func @transform_9(%arg0: i32, %arg1: i32) -> (i32, i32, i32) {
    %c0_i32 = arith.constant 0 : i32
    %c0_i32_0 = arith.constant 0 : i32
    return %arg0, %arg1, %c0_i32 : i32, i32, i32
  }
}

</mosaic_0001>

<bundles_post_ra>
// kernel: tpu_custom_call.1
= control target key start
LH: loop header
LB: loop body
LE: loop exit
PB: predicated region body
PF: predicated region fallthrough
CT: control target
= control target key end

     0   :  { %14 = vsyncpa [#allocation5], 0  ;;  %s2224_s0 = inlined_call_operand.vmem [shape: bf16[2,16,32], index: 0, kind: input, shape index: {}]   ;;  %s2225_s1 = inlined_call_operand.vmem [shape: bf16[32,32], index: 1, kind: input, shape index: {}]   ;;  %s2226_s2 = inlined_call_operand.hbm [shape: f32[1,32], index: 2, kind: input, shape index: {}]   ;;  %s2227_s3 = inlined_call_operand.hbm [shape: bf16[32,32], index: 3, kind: input, shape index: {}]   ;;  %s2228_s4 = inlined_call_operand.vmem [shape: f32[32,1], index: 4, kind: input, shape index: {}]   ;;  %s2229_s5 = inlined_call_operand.vmem [shape: bf16[32,32], index: 5, kind: input, shape index: {}]   ;;  %s2230_s6 = inlined_call_operand.vmem [shape: f32[1,32], index: 6, kind: input, shape index: {}]   ;;  %s2231_s7 = inlined_call_operand.hbm [shape: bf16[32,32], index: 7, kind: input, shape index: {}]   ;;  %s2232_s8 = inlined_call_operand.vmem [shape: f32[1,32], index: 8, kind: input, shape index: {}]   ;;  %s2233_s9 = inlined_call_operand.hbm [shape: f32[2,16,32], index: 9, kind: output, shape index: {}]  }
   0x1   :  { %15 = vsyncpa [#allocation8], 0 }
   0x2   :  { %16 = vsyncpa [#allocation6], 0 }
   0x3   :  { %18 = vsyncpa [#allocation6 + $0x1], 0  ;;  %s1897_s30 = smov 0   ;;  %s1899_s10 = smov 0  }
   0x4   :  { %s1901_s11 = smov 0   ;;  %s1903_s12 = smov 0  }
   0x5   :  { %s1905_s13 = smov 0   ;;  %s1907_s14 = smov 0  }
   0x6 LB: > { %2244 = sst [smem:[#allocation14_spill]] %s1809_s30  ;;  %s1363_s15 = sadd.s32 4294967295, %s1829_s14   ;;  %s1829_s14 = sphi %s1907_s14, %s24_s14   ;;  %s1825_s13 = sphi %s1905_s13, %s2266_s13   ;;  %s1821_s12 = sphi %s1903_s12, %s2265_s12   ;;  %s1817_s11 = sphi %s1901_s11, %s2264_s11   ;;  %s1813_s10 = sphi %s1899_s10, %s2268_s10   ;;  %s1809_s30 = sphi %s1897_s30, %s2267_s30  }
   0x7   : > { %2245 = sst [smem:[#allocation15_spill]] %s1817_s11  ;;  %s1364_s16 = sadd.s32 4294967294, %s1829_s14  }
   0x8   : > { %2246 = sst [smem:[#allocation16_spill]] %s1825_s13  ;;  %s36_s17 = sadd.s32 1, %s1825_s13 }
   0x9   : > { %s239_s18 = sadd.s32 1, %s1817_s11  ;;  %p38_p0 = scmp.ge.s32.totalorder %s36_s17, 2 }
   0xa   : > { %p249_p1 = scmp.ne.s32.totalorder %s1817_s11, %s1813_s10  ;;  %p250_p2 = scmp.eq.s32.totalorder %s1363_s15, 1 }
   0xb   : > { %p255_p3 = scmp.ne.s32.totalorder %s1813_s10, %s1809_s30  ;;  %s2270_s17 = smov (%p38_p0, %s36_s17), 0 }
   0xc   : > { %2247 = sst [smem:[#allocation17_spill]] %s2270_s17  ;;  %p1937_p4 = por %p250_p2, %p249_p1 }
   0xd   : > { %p256_p5 = scmp.eq.s32.totalorder %s1364_s16, 1  ;;  %s234_s20 = ssub.s32 %s1825_s13, %s2270_s17 }
   0xe   : > { %s2248_s19 = scalar_select %p1937_p4, 1, 0 }
   0xf   : > { %p1365_p6 = scmp.ge.s32.totalorder %s1829_s14, 1  ;;  %p237_p7 = scmp.eq.s32.totalorder %s234_s20, 0 }
  0x10   : > { %p1944_p8 = por %p256_p5, %p255_p3  ;;  %p263_p9 = scmp.lt.s32.totalorder %s1829_s14, 3 }
  0x11   : > { %s1950_s22 = scalar_select %p237_p7, %s1817_s11, %s239_s18  }
  0x12   : > { %s2249_s21 = scalar_select %p1944_p8, 1, 0 }
  0x13   : > { %2251 = sst [smem:[#allocation19_spill]] %s1950_s22  ;;  %p1952_p10 = pnand %p1365_p6, %p263_p9 }
  0x14   : > { %2250 = sst [smem:[#allocation18_spill]] %s2249_s21  ;;  %p1956_p11 = scmp.eq.s32.totalorder %s1363_s15, 0 }
  0x15   : > { %s2252_s23 = scalar_select %p1952_p10, 1, 0 }
  0x16   : > { %s2253_s24 = scalar_select %p1956_p11, 1, 0 }
  0x17   : > { %p1531_p12 = pneg %p1952_p10  ;;  %s1831_s25 = smov [#allocation7]  }
  0x18   : > { %s289_s26 = sshll.u32 %s1831_s25, 4  ;;  %s1832_s28 = smov [#allocation4]   ;;  %s290_s26 = int_to_ptr.vmem [resolvable:$true] %s289_s26 }
  0x19   : > { %p1964_p13 = pnand %p1956_p11, %p1531_p12  ;;  %s279_s29 = sshll.u32 %s1832_s28, 4  ;;  %s280_s29 = int_to_ptr.vmem [resolvable:$true] %s279_s29 }
  0x1a   : > { %s1659_s15 = scalar_lea.hbm %s2227_s3, 256 }
  0x1b   : > { %p1660_p0 = scmp.ne.s32.totalorder %s2227_s3, %s1659_s15  ;;  %p1976_p1 = pneg %p1964_p13 }
  0x1c   : > { %p1666_p5 = scmp.lt.u32.totalorder %s1659_s15, %s2227_s3 }
  0x1d   : > { %p1662_p2 = pnand %p1976_p1, %p1660_p0 }
  0x1f   : > { %p1663_p3 = pneg %p1662_p2 }
  0x21   : > { %p1668_p6 = pnand %p1666_p5, %p1663_p3 }
  0x23   : > { %1671 = shalt.err (!%p1668_p6)
}
  0x24   : > { %s1672_s28 = scalar_lea.vmem %s290_s26, 256  ;;  %p1680_p8 = scmp.lt.s32.totalorder %s290_s26, %s290_s26 }
  0x25   : > { %p1673_p7 = scmp.ne.s32.totalorder %s290_s26, %s1672_s28  ;;  %p1681_p4 = scmp.lt.s32.totalorder %s1672_s28, %s1672_s28 }
  0x27   : > { %p1675_p9 = pnand %p1673_p7, %p1976_p1  ;;  %p1682_p11 = por %p1681_p4, %p1680_p8 }
  0x29   : > { %p1676_p12 = pneg %p1675_p9 }
  0x2b   : > { %p1683_p10 = pnand %p1682_p11, %p1676_p12 }
  0x2d   : > { %1686 = shalt.err (!%p1683_p10)
}
  0x2e   : > { %s2243_s17 = smov 64   ;;  %s1834_s16 = smov 4  }
  0x2f   : > { %1537 = dma.hbm_to_vmem [thread:$0]  (!%p1964_p13), %s2227_s3, 256, %s290_s26, [#allocation8], %s2243_s17, %s2243_s17, %s1834_s16  }
  0x30   : > { %s1687_s20 = scalar_lea.hbm %s2226_s2, 16 }
  0x31   : > { %p1688_p4 = scmp.ne.s32.totalorder %s2226_s2, %s1687_s20  ;;  %p1694_p11 = scmp.lt.u32.totalorder %s1687_s20, %s2226_s2 }
  0x33   : > { %p1690_p8 = pnand %p1688_p4, %p1976_p1 }
  0x35   : > { %p1691_p10 = pneg %p1690_p8 }
  0x37   : > { %p1696_p0 = pnand %p1694_p11, %p1691_p10 }
  0x39   : > { %1699 = shalt.err (!%p1696_p0)
}
  0x3a   : > { %s1700_s13 = scalar_lea.vmem %s280_s29, 16  ;;  %s1707_s26 = scalar_lea.vmem %s280_s29, 32 }
  0x3b   : > { %p1701_p2 = scmp.ne.s32.totalorder %s280_s29, %s1700_s13  ;;  %p1708_p6 = scmp.lt.s32.totalorder %s280_s29, %s280_s29 }
  0x3c   : > { %p1709_p7 = scmp.lt.s32.totalorder %s1707_s26, %s1700_s13 }
  0x3d   : > { %p1703_p3 = pnand %p1701_p2, %p1976_p1 }
  0x3e   : > { %p1710_p9 = por %p1709_p7, %p1708_p6 }
  0x3f   : > { %p1704_p5 = pneg %p1703_p3 }
  0x41   : > { %p1711_p12 = pnand %p1710_p9, %p1704_p5 }
  0x43   : > { %1714 = shalt.err (!%p1711_p12)
}
  0x44   : > { %1534 = dma.hbm_to_vmem [thread:$0]  (!%p1964_p13), %s2226_s2, 16, %s280_s29, [#allocation5]  }
  0x45   : > { %s1835_s30 = smov [#allocation9]   ;;  %s1715_s20 = scalar_lea.hbm %s2231_s7, 256 }
  0x46   : > { %s311_s21 = sshll.u32 %s1835_s30, 4  ;;  %p1716_p4 = scmp.ne.s32.totalorder %s2231_s7, %s1715_s20  ;;  %s312_s21 = int_to_ptr.vmem [resolvable:$true] %s311_s21 }
  0x47   : > { %p1722_p11 = scmp.lt.u32.totalorder %s1715_s20, %s2231_s7 }
  0x48   : > { %p1718_p8 = pnand %p1716_p4, %p1976_p1 }
  0x4a   : > { %p1719_p10 = pneg %p1718_p8 }
  0x4c   : > { %p1724_p0 = pnand %p1722_p11, %p1719_p10 }
  0x4e   : > { %1727 = shalt.err (!%p1724_p0)
}
  0x4f   : > { %s1728_s29 = scalar_lea.vmem %s312_s21, 256  ;;  %p1736_p6 = scmp.lt.s32.totalorder %s312_s21, %s312_s21 }
  0x50   : > { %p1729_p2 = scmp.ne.s32.totalorder %s312_s21, %s1728_s29  ;;  %p1737_p7 = scmp.lt.s32.totalorder %s1728_s29, %s1728_s29 }
  0x52   : > { %p1731_p3 = pnand %p1729_p2, %p1976_p1  ;;  %p1738_p9 = por %p1737_p7, %p1736_p6 }
  0x54   : > { %p1732_p5 = pneg %p1731_p3 }
  0x56   : > { %p1739_p12 = pnand %p1738_p9, %p1732_p5 }
  0x58   : > { %1742 = shalt.err (!%p1739_p12)
}
  0x59   : > { %s2256_s17 = smov 64   ;;  %p2257_p4 = scmp.ne.s32.totalorder %s2252_s23, 0 }
  0x5a   : > { %1540 = dma.hbm_to_vmem [thread:$0]  (!%p1964_p13), %s2231_s7, 256, %s312_s21, [#allocation8], %s2256_s17, %s2256_s17, %s1834_s16  }
  0x5b   : > { %338 = sbr.rel (%p2257_p4) target bundleno = 1508 (0x5e4), region = 56  ;;  %p2258_p1 = scmp.ne.s32.totalorder (!%p2257_p4), %s2253_s24, 0 }
  0x62   : > { %1796 = dma.done.wait (%p2258_p1), [#allocation5], 16  }
  0x63   : > { %1798 = vsyncadd (%p2258_p1), [#allocation5], 4294967280 }
  0x64   : > { %1800 = dma.done.wait (%p2258_p1), [#allocation8], 512  }
  0x65   : > { %1802 = vsyncadd (%p2258_p1), [#allocation8], 4294966784  ;;  %p382_p8 = scmp.lt.s32.totalorder %s1821_s12, 1  ;;  %v1836_v0 = vmov 0.0   ;;  %vm1837_vm0 = vmmov 0   ;;  %v1838_v1 = vmov 0  }
  0x66   : > { %1444 = vmatprep.subr.bf16.mxu1 %v1836_v0  ;;  %1448 = vmatprep.mubr.msk.bf16.mxu1 %vm1837_vm0, %v1836_v0  ;;  %v1617_v2 = vld [vmem:[#allocation7] sm:$0xff]   ;;  %v1618_v3 = vld [vmem:[#allocation7 + $0x8] sm:$0xff]   ;;  %vm456_vm1 = vcmask 261120   ;;  %v401_v9 = vld [vmem:[%s2228_s4 + $0x10] sm:$0xff]  ;;  %vm517_vm2 = vcmask 130048   ;;  %vm672_vm3 = vcmask 1043456  }
  0x67   : > { %s383_s23 = scalar_select %p382_p8, %s1821_s12, 1  ;;  %1615 = vset.pattern.permute.xlu1 %v1838_v1  ;;  %435 = vxpose.xlu0.c.b16.start [1/2] (short) (narrow) %v1617_v2, 32  ;;  %v399_v6 = vld [vmem:[%s2228_s4] sm:$0xff]  ;;  %v400_v7 = vld [vmem:[%s2228_s4 + $0x8] sm:$0xff]  ;;  %v402_v8 = vld [vmem:[%s2228_s4 + $0x18] sm:$0xff]  ;;  %vm668_vm4 = vcmask 64512  }
  0x68   : > { %405 = vperm.xlu1 %1615, %v399_v6   ;;  %v1620_v11 = vld [vmem:[%s2225_s1] sm:$0xff]   ;;  %v1621_v13 = vld [vmem:[%s2225_s1 + $0x8] sm:$0xff]   ;;  %v1386_v31 = vld [vmem:[#allocation4] ss:$0 sm:$0xff]  ;;  %s1840_s24 = smov 120   ;;  %s1841_s21 = smov 112  }
  0x69   : > { %s1408_s27 = sshll.u32 %s383_s23, 3  ;;  %v1623_v15 = vld [vmem:[%s2229_s5] sm:$0xff]   ;;  %v1624_v16 = vld [vmem:[%s2229_s5 + $0x8] sm:$0xff]   ;;  %s1842_s20 = smov 8   ;;  %vm1170_vm5 = vcmask 195584  }
  0x6a   : > { %s386_s30 = scalar_lea.vmem %s2224_s0, %s1408_s27  ;;  %1445 = vmatpush3.bf16.msra.mxu1 %v1623_v15  ;;  %v1382_v44 = vld [vmem:[%s2230_s6] ss:$0 sm:$0xff]  ;;  %s1843_s28 = smov 16  }
  0x6b   : > { %v1619_v4 = vld [vmem:[%s386_s30] sm:$0xff]   ;;  %436 = vxpose.xlu0.c.b16.end [2/2] (short) (narrow) %v1618_v3, 32  ;;  %1446 = vmatprep.subr.bf16.mxu1 %v1836_v0  ;;  %s1844_s13 = smov 24   ;;  %s379_s26 = sand.u32 1, %s1813_s10  }
  0x6c   : > { %1516 = vmatprep.subr.msk.bf16.mxu0 %vm456_vm1, %v1619_v4  ;;  %v464_v5 = vsel %vm456_vm1, %v1619_v4, 0  ;;  %410 = vperm.xlu1 %1615, %v400_v7   ;;  %v1622_v14 = vld [vmem:[%s386_s30] sm:$0xff]   ;;  %s1839_s30 = smov 104   ;;  %s1374_s29 = sshll.u32 %s379_s26, 4 }
  0x6d   : > { %1439 = vmatpush3.bf16.xpose.msra.mxu0 %v464_v5  ;;  %s381_s22 = scalar_lea.vmem [#allocation10], %s1374_s29  ;;  %s1409_s27 = sshll.u32 %s1821_s12, 8 }
  0x6e   : > { %1452 = vmatprep.subr.bf16.mxu0 %v1836_v0  ;;  %1447 = vmatpush3.bf16.msra.mxu1 %v1624_v16  ;;  %s1257_s23 = sshll.u32 %s381_s22, 4  ;;  %s2177_s12 = scalar_lea.sflag [#allocation6], %s379_s26  ;;  %s2168_s23 = int_to_ptr.vmem [resolvable:$true] %s1257_s23 }
  0x6f   : > { %1460 = vmatprep.subr.bf16.mxu1 %v1836_v0  ;;  %p2259_p10 = scmp.ne.s32.totalorder %s2248_s19, 0 }
  0x70   : > { %420 = vperm.xlu1 %1615, %v402_v8  }
  0x71   : > { %1449 = vmatmul.mubr.msk.bf16.vlgmr.msra.gmra.mrb[0].mxu1 %vm456_vm1, %v1619_v4 }
  0x72   : > { %1462 = vmatprep.mubr.msk.bf16.mxu1 %vm1837_vm0, %v1836_v0 }
  0x74   : > { %1616 = vset.pattern.permute.xlu0 %v1838_v1 }
  0x75   : > { %415 = vperm.xlu0 %1616, %v401_v9  }
  0xcd   : > { %v443_v10 = vpop.trf.xlu0 }
  0xce   : > { %1440 = vmatprep.mubr.msk.bf16.mxu0 %vm456_vm1, %v443_v10 }
  0xd1   : > { %v444_v12 = vpop.trf.xlu0 }
  0xd2   : > { %1441 = vmatmul.mubr.msk.bf16.vlgmr.msra.gmra.mrb[0].mxu0 %vm456_vm1, %v444_v12 }
  0xd3   : > { %1453 = vmatpush3.bf16.msra.mxu0 %v1620_v11  ;;  %1456 = vmatprep.mubr.msk.bf16.mxu0 %vm1837_vm0, %v1836_v0 }
  0xd4   : > { %1454 = vmatprep.subr.bf16.mxu0 %v1836_v0 }
  0xd7   : > { %1455 = vmatpush3.bf16.msra.mxu0 %v1621_v13 }
  0xd8   : > { %1466 = vmatprep.subr.bf16.mxu0 %v1836_v0 }
  0xda   : > { %1457 = vmatmul.mubr.msk.bf16.vlgmr.msra.gmra.mrb[4].mxu0 %vm456_vm1, %v1622_v14 }
  0xdb   : > { %1468 = vmatprep.mubr.msk.bf16.mxu0 %vm1837_vm0, %v1836_v0 }
  0xe7   : > { %v406_v17 = vpop.permute.xlu1 %405 }
  0xeb   : > { %v411_v18 = vpop.permute.xlu1 %410 }
  0xef   : > { %v421_v21 = vpop.permute.xlu1 %420 }
  0xf4   : > { %v416_v19 = vpop.permute.xlu0 %415 }
 0x144   : > { %v577_v45 = vpop.f32.mrb[0].mxu1 }
 0x145   : > { %v578_v46 = vadd.f32 %v1382_v44, %v577_v45  ;;  %v1450_v47 = vpop.f32.mrb[1].mxu1 }
 0x146   : > { %v580_v48 = vpop.f32.mrb[2].mxu1 }
 0x147   : > { %v581_v49 = vadd.f32 %v1382_v44, %v580_v48  ;;  %v1451_v50 = vpop.f32.mrb[3].mxu1 }
 0x149   : > { %v584_v51 = vpack.c.bf16 %v581_v49, %v578_v46 }
 0x14b   : > { %585 = vst.msk [vmem:[#allocation3] sm:$0xff] %vm456_vm1, %v584_v51 }
 0x152   : > { %v737_v52 = vld [vmem:[#allocation3] sm:$0xff] }
 0x153   : > { %1467 = vmatpush3.bf16.msra.mxu0 %v737_v52 }
 0x154   : > { %1478 = vmatprep.subr.bf16.mxu0 %v1836_v0 }
 0x1a5   : > { %v1442_v20 = vpop.f32.mrb[0].mxu0 }
 0x1a6   : > { %v500_v22 = vpop.f32.mrb[1].mxu0  ;;  %v509_v24 = vadd.f32 %v1442_v20, %v416_v19 }
 0x1a7   : > { %v1443_v23 = vpop.f32.mrb[2].mxu0  ;;  %v501_v27 = vadd.f32 %v500_v22, %v406_v17 }
 0x1a8   : > { %v512_v25 = vadd.f32 %v1443_v23, %v421_v21  ;;  %v503_v26 = vpop.f32.mrb[3].mxu0 }
 0x1a9   : > { %v504_v28 = vadd.f32 %v503_v26, %v411_v18 }
 0x1aa   : > { %v516_v29 = vpack.c.bf16 %v512_v25, %v509_v24 }
 0x1ab   : > { %v515_v30 = vpack.c.bf16 %v504_v28, %v501_v27 }
 0x1ac   : > { %519 = vst.msk [vmem:[#allocation2 + $0x8] sm:$0xff] %vm517_vm2, %v516_v29 }
 0x1ad   : > { %518 = vst.msk [vmem:[#allocation2] sm:$0xff] %vm517_vm2, %v515_v30  ;;  %v659_v32 = vpop.f32.mrb[4].mxu0 }
 0x1ae   : > { %v1458_v33 = vpop.f32.mrb[5].mxu0  ;;  %v660_v35 = vadd.f32 %v1386_v31, %v659_v32 }
 0x1af   : > { %v662_v34 = vpop.f32.mrb[6].mxu0 }
 0x1b0   : > { %v663_v36 = vadd.f32 %v1386_v31, %v662_v34  ;;  %v1459_v37 = vpop.f32.mrb[7].mxu0 }
 0x1b2   : > { %v666_v38 = vpack.c.bf16 %v663_v36, %v660_v35 }
 0x1b3   : > { %v912_v53 = vld [vmem:[#allocation2 + $0x8] sm:$0xf]  ;;  %v1033_v56 = vld [vmem:[#allocation2 + $0x8] sm:$0xf0] }
 0x1b4   : > { %1034 = vrot.lane.b32.xlu0 %v666_v38, %s1839_s30  ;;  %789 = vrot.lane.b32.xlu1 %v666_v38, %s1840_s24  ;;  %v667_v39 = vld [vmem:[#allocation2] sm:$0xf]  ;;  %v787_v40 = vld [vmem:[#allocation2] sm:$0xf0]  ;;  %v919_v55 = vsel %vm672_vm3, %v912_v53, 0  ;;  %v1037_v57 = vrot.slane %v1033_v56, 4 }
 0x1b5   : > { %v674_v41 = vsel %vm672_vm3, %v667_v39, 0  ;;  %v792_v42 = vrot.slane %v787_v40, 4 }
 0x1b6   : > { %1461 = vmatpush3.bf16.msra.mxu1 %v674_v41  ;;  %v1042_v59 = vsel %vm672_vm3, %v1037_v57, 0 }
 0x1b7   : > { %1472 = vmatprep.subr.bf16.mxu1 %v1836_v0  ;;  %v797_v43 = vsel %vm672_vm3, %v792_v42, 0 }
 0x1b8   : > { %913 = vrot.lane.b32.xlu1 %v666_v38, %s1841_s21 }
 0x1b9   : > { %1463 = vmatmul.mubr.msk.bf16.vlgmr.msra.gmra.mrb[4].mxu1 %vm668_vm4, %v666_v38 }
 0x1ba   : > { %1473 = vmatpush3.bf16.msra.mxu1 %v797_v43  ;;  %1474 = vmatprep.mubr.msk.bf16.mxu1 %vm1837_vm0, %v1836_v0 }
 0x1bb   : > { %1484 = vmatprep.subr.bf16.mxu1 %v1836_v0 }
 0x226   : > { %v790_v54 = vpop.permute.xlu1 %789  ;;  %v1035_v60 = vpop.permute.xlu0 %1034 }
 0x227   : > { %1475 = vmatmul.mubr.msk.bf16.vlgmr.msra.gmra.mrb[8].mxu1 %vm668_vm4, %v790_v54 }
 0x228   : > { %1485 = vmatpush3.bf16.msra.mxu1 %v919_v55  ;;  %1486 = vmatprep.mubr.msk.bf16.mxu1 %vm1837_vm0, %v1836_v0 }
 0x229   : > { %1496 = vmatprep.subr.bf16.mxu1 %v1836_v0 }
 0x22a   : > { %v914_v58 = vpop.permute.xlu1 %913 }
 0x22f   : > { %1487 = vmatmul.mubr.msk.bf16.vlgmr.msra.gmra.mrb[12].mxu1 %vm668_vm4, %v914_v58 }
 0x230   : > { %1497 = vmatpush3.bf16.msra.mxu1 %v1042_v59  ;;  %1498 = vmatprep.mubr.msk.bf16.mxu1 %vm1837_vm0, %v1836_v0 }
 0x231   : > { %1508 = vmatprep.subr.bf16.mxu1 %v1836_v0 }
 0x237   : > { %1499 = vmatmul.mubr.msk.bf16.vlgmr.msra.gmra.mrb[16].mxu1 %vm668_vm4, %v1035_v60 }
 0x238   : > { %1512 = vmatprep.mubr.msk.bf16.mxu1 %vm1837_vm0, %v1836_v0 }
 0x28c   : > { %v710_v61 = vpop.f32.mrb[4].mxu1 }
 0x28d   : > { %v1464_v62 = vpop.f32.mrb[5].mxu1  ;;  %v718_v63 = vsel %vm517_vm2, %v710_v61, -inf }
 0x28e   : > { %719 = vmax.xlane.f32.xlu1 %v718_v63  ;;  %v713_v1 = vpop.f32.mrb[6].mxu1 }
 0x28f   : > { %v1465_v2 = vpop.f32.mrb[7].mxu1  ;;  %v721_v3 = vsel %vm517_vm2, %v713_v1, -inf }
 0x290   : > { %722 = vmax.xlane.f32.xlu0 %v721_v3 }
 0x29f   : > { %860 = vrot.lane.b32.xlu1 %v737_v52, %s1840_s24  ;;  %s1743_s24 = scalar_lea.vmem %s2168_s23, 256 }
 0x2a0   : > { %p1744_p13 = scmp.ne.s32.totalorder %s2168_s23, %s1743_s24 }
 0x2a2   : > { %p1745_p11 = pnand %p1744_p13, %p2259_p10 }
 0x2a4   : > { %p1746_p0 = pneg %p1745_p11 }
 0x2fa   : > { %v833_v4 = vpop.f32.mrb[8].mxu1 }
 0x2fb   : > { %v1476_v5 = vpop.f32.mrb[9].mxu1  ;;  %v840_v6 = vsel %vm517_vm2, %v833_v4, -inf }
 0x2fc   : > { %841 = vmax.xlane.f32.xlu0 %v840_v6  ;;  %v836_v7 = vpop.f32.mrb[10].mxu1 }
 0x2fd   : > { %v1477_v8 = vpop.f32.mrb[11].mxu1  ;;  %v843_v9 = vsel %vm517_vm2, %v836_v7, -inf }
 0x300   : > { %844 = vmax.xlane.f32.xlu0 %v843_v9 }
 0x302   : > { %v955_v10 = vpop.f32.mrb[12].mxu1 }
 0x303   : > { %v1488_v11 = vpop.f32.mrb[13].mxu1  ;;  %v962_v12 = vsel %vm517_vm2, %v955_v10, -inf }
 0x304   : > { %963 = vmax.xlane.f32.xlu1 %v962_v12  ;;  %v958_v13 = vpop.f32.mrb[14].mxu1 }
 0x305   : > { %v1489_v14 = vpop.f32.mrb[15].mxu1  ;;  %v965_v15 = vsel %vm517_vm2, %v958_v13, -inf }
 0x306   : > { %966 = vmax.xlane.f32.xlu0 %v965_v15 }
 0x30a   : > { %v1078_v16 = vpop.f32.mrb[16].mxu1 }
 0x30b   : > { %v1500_v17 = vpop.f32.mrb[17].mxu1  ;;  %v1085_v18 = vsel %vm517_vm2, %v1078_v16, -inf }
 0x30c   : > { %1086 = vmax.xlane.f32.xlu1 %v1085_v18  ;;  %v1081_v19 = vpop.f32.mrb[18].mxu1 }
 0x30d   : > { %v1501_v20 = vpop.f32.mrb[19].mxu1  ;;  %v1088_v21 = vsel %vm517_vm2, %v1081_v19, -inf }
 0x30e   : > { %1089 = vmax.xlane.f32.xlu0 %v1088_v21 }
 0x31b   : > { %v720_v22 = vpop.xlane.xlu1 %719 }
 0x31c   : > { %v724_v23 = vsub.f32 %v710_v61, %v720_v22 }
 0x31d   : > { %v723_v24 = vpop.xlane.xlu0 %722  ;;  %1104 = vrot.lane.b32.xlu1 %v737_v52, %s1839_s30  ;;  %s2174_s30 = scalar_lea.hbm %s2233_s9, %s1409_s27 }
 0x31e   : > { %v726_v25 = vmul.f32 1.442695, %v724_v23  ;;  %v725_v26 = vsub.f32 %v713_v1, %v723_v24 }
 0x31f   : > { %v861_v31 = vpop.permute.xlu1 %860 }
 0x320   : > { %v728_v27 = vmul.f32 1.442695, %v725_v26  ;;  %1627 = vpow2.f32 %v726_v25 }
 0x322   : > { %1629 = vpow2.f32 %v728_v27 }
 0x324   : > { %981 = vrot.lane.b32.xlu0 %v737_v52, %s1841_s21  ;;  %s1845_s21 = smov [#allocation10]  }
 0x325   : > { %s1747_s18 = sshll.u32 %s1845_s21, 4  ;;  %s1748_s18 = int_to_ptr.vmem [resolvable:$false] %s1747_s18 }
 0x326   : > { %s1749_s15 = scalar_lea.vmem %s1748_s18, 512  ;;  %p1750_p2 = scmp.lt.s32.totalorder %s2168_s23, %s1748_s18 }
 0x327   : > { %p1751_p3 = scmp.lt.s32.totalorder %s1749_s15, %s1743_s24 }
 0x329   : > { %p1752_p5 = por %p1751_p3, %p1750_p2 }
 0x32a   : > { %v1628_v28 = vpop.eup %1627 }
 0x32b   : > { %p1753_p6 = pnand %p1752_p5, %p1746_p0 }
 0x32c   : > { %v2134_v29 = vpop.eup %1629 }
 0x32d   : > { %v736_v30 = vpack.c.bf16 %v2134_v29, %v1628_v28  ;;  %v733_v5 = vsel %vm517_vm2, %v2134_v29, 0.0 }
 0x32f   : > { %1469 = vmatmul.mubr.msk.bf16.vlgmr.msra.gmra.mrb[8].mxu0 %vm517_vm2, %v736_v30 }
 0x330   : > { %1479 = vmatpush3.bf16.msra.mxu0 %v861_v31  ;;  %1480 = vmatprep.mubr.msk.bf16.mxu0 %vm1837_vm0, %v1836_v0 }
 0x331   : > { %1490 = vmatprep.subr.bf16.mxu0 %v1836_v0 }
 0x389   : > { %v842_v32 = vpop.xlane.xlu0 %841 }
 0x38a   : > { %v846_v33 = vsub.f32 %v833_v4, %v842_v32  ;;  %v730_v4 = vsel %vm517_vm2, %v1628_v28, 0.0  ;;  %v1625_v28 = vld [vmem:[#allocation9] sm:$0xff]   ;;  %v1626_v32 = vld [vmem:[#allocation9 + $0x8] sm:$0xff]  }
 0x38b   : > { %1509 = vmatpush3.bf16.msra.mxu1 %v1625_v28 }
 0x38c   : > { %v848_v34 = vmul.f32 1.442695, %v846_v33  ;;  %1510 = vmatprep.subr.bf16.mxu1 %v1836_v0 }
 0x38d   : > { %v845_v35 = vpop.xlane.xlu0 %844 }
 0x38e   : > { %1631 = vpow2.f32 %v848_v34  ;;  %v847_v36 = vsub.f32 %v836_v7, %v845_v35 }
 0x38f   : > { %1511 = vmatpush3.bf16.msra.mxu1 %v1626_v32 }
 0x390   : > { %v850_v37 = vmul.f32 1.442695, %v847_v36 }
 0x391   : > { %v964_v38 = vpop.xlane.xlu1 %963 }
 0x392   : > { %1633 = vpow2.f32 %v850_v37  ;;  %v968_v39 = vsub.f32 %v955_v10, %v964_v38 }
 0x393   : > { %v967_v40 = vpop.xlane.xlu0 %966 }
 0x394   : > { %v970_v41 = vmul.f32 1.442695, %v968_v39  ;;  %v969_v42 = vsub.f32 %v958_v13, %v967_v40 }
 0x396   : > { %1635 = vpow2.f32 %v970_v41  ;;  %v972_v43 = vmul.f32 1.442695, %v969_v42 }
 0x398   : > { %v1632_v44 = vpop.eup %1631  ;;  %1637 = vpow2.f32 %v972_v43 }
 0x399   : > { %v1087_v45 = vpop.xlane.xlu1 %1086  ;;  %v852_v46 = vsel %vm517_vm2, %v1632_v44, 0.0 }
 0x39a   : > { %v1091_v47 = vsub.f32 %v1078_v16, %v1087_v45  ;;  %853 = vadd.xlane.f32.xlu1 %v852_v46 }
 0x39b   : > { %v1090_v48 = vpop.xlane.xlu0 %1089 }
 0x39c   : > { %v1634_v49 = vpop.eup %1633  ;;  %v1093_v50 = vmul.f32 1.442695, %v1091_v47  ;;  %v1092_v51 = vsub.f32 %v1081_v19, %v1090_v48 }
 0x39d   : > { %v855_v52 = vsel %vm517_vm2, %v1634_v49, 0.0  ;;  %v858_v53 = vpack.c.bf16 %v1634_v49, %v1632_v44  ;;  %v1105_v61 = vpop.permute.xlu1 %1104 }
 0x39e   : > { %1639 = vpow2.f32 %v1093_v50  ;;  %v1095_v54 = vmul.f32 1.442695, %v1092_v51  ;;  %856 = vadd.xlane.f32.xlu0 %v855_v52 }
 0x39f   : > { %1481 = vmatmul.mubr.msk.bf16.vlgmr.msra.gmra.mrb[12].mxu0 %vm517_vm2, %v858_v53  ;;  %v982_v55 = vpop.permute.xlu0 %981 }
 0x3a0   : > { %v1636_v56 = vpop.eup %1635  ;;  %1641 = vpow2.f32 %v1095_v54  ;;  %1491 = vmatpush3.bf16.msra.mxu0 %v982_v55  ;;  %1492 = vmatprep.mubr.msk.bf16.mxu0 %vm1837_vm0, %v1836_v0 }
 0x3a1   : > { %v974_v57 = vsel %vm517_vm2, %v1636_v56, 0.0  ;;  %1502 = vmatprep.subr.bf16.mxu0 %v1836_v0 }
 0x3a2   : > { %v1638_v58 = vpop.eup %1637  ;;  %975 = vadd.xlane.f32.xlu0 %v974_v57  ;;  %v1399_v57 = vld [vmem:[%s2232_s8] ss:$0 sm:$0xff] }
 0x3a3   : > { %v977_v59 = vsel %vm517_vm2, %v1638_v58, 0.0  ;;  %v980_v60 = vpack.c.bf16 %v1638_v58, %v1636_v56 }
 0x3a4   : > { %978 = vadd.xlane.f32.xlu1 %v977_v59 }
 0x3a7   : > { %1493 = vmatmul.mubr.msk.bf16.vlgmr.msra.gmra.mrb[16].mxu0 %vm517_vm2, %v980_v60 }
 0x3a8   : > { %v1640_v62 = vpop.eup %1639  ;;  %1503 = vmatpush3.bf16.msra.mxu0 %v1105_v61  ;;  %1504 = vmatprep.mubr.msk.bf16.mxu0 %vm1837_vm0, %v1836_v0 }
 0x3a9   : > { %v1097_v63 = vsel %vm517_vm2, %v1640_v62, 0.0 }
 0x3aa   : > { %v1642_v1 = vpop.eup %1641  ;;  %1098 = vadd.xlane.f32.xlu0 %v1097_v63 }
 0x3ab   : > { %v1100_v2 = vsel %vm517_vm2, %v1642_v1, 0.0  ;;  %v1103_v3 = vpack.c.bf16 %v1642_v1, %v1640_v62 }
 0x3ac   : > { %1101 = vadd.xlane.f32.xlu1 %v1100_v2 }
 0x3ae   : > { %731 = vadd.xlane.f32.xlu0 %v730_v4 }
 0x3af   : > { %1505 = vmatmul.mubr.msk.bf16.vlgmr.msra.gmra.mrb[20].mxu0 %vm517_vm2, %v1103_v3 }
 0x3b0   : > { %734 = vadd.xlane.f32.xlu1 %v733_v5 }
 0x402   : > { %v775_v6 = vpop.f32.mrb[8].mxu0 }
 0x403   : > { %v1470_v7 = vpop.f32.mrb[9].mxu0 }
 0x404   : > { %v778_v8 = vpop.f32.mrb[10].mxu0 }
 0x405   : > { %v1471_v9 = vpop.f32.mrb[11].mxu0 }
 0x427   : > { %v854_v11 = vpop.xlane.xlu1 %853 }
 0x42b   : > { %v857_v10 = vpop.xlane.xlu0 %856 }
 0x42f   : > { %v976_v12 = vpop.xlane.xlu0 %975 }
 0x431   : > { %v979_v13 = vpop.xlane.xlu1 %978 }
 0x437   : > { %v1099_v14 = vpop.xlane.xlu0 %1098 }
 0x439   : > { %v1102_v15 = vpop.xlane.xlu1 %1101 }
 0x43b   : > { %v732_v16 = vpop.xlane.xlu0 %731 }
 0x43c   : > { %1643 = vrcp.f32 %v732_v16 }
 0x43d   : > { %v735_v17 = vpop.xlane.xlu1 %734 }
 0x43e   : > { %1645 = vrcp.f32 %v735_v17 }
 0x43f   : > { %1647 = vrcp.f32 %v854_v11 }
 0x440   : > { %1649 = vrcp.f32 %v857_v10 }
 0x441   : > { %1651 = vrcp.f32 %v976_v12 }
 0x442   : > { %1653 = vrcp.f32 %v979_v13 }
 0x443   : > { %1655 = vrcp.f32 %v1099_v14 }
 0x444   : > { %1657 = vrcp.f32 %v1102_v15 }
 0x446   : > { %v1644_v18 = vpop.eup %1643 }
 0x447   : > { %v784_v20 = vmul.f32 %v1644_v18, %v775_v6 }
 0x448   : > { %v1646_v19 = vpop.eup %1645 }
 0x449   : > { %v785_v21 = vmul.f32 %v1646_v19, %v778_v8  ;;  %v1648_v24 = vpop.eup %1647 }
 0x44a   : > { %v1650_v26 = vpop.eup %1649 }
 0x44b   : > { %v786_v22 = vpack.c.bf16 %v785_v21, %v784_v20  ;;  %v1652_v35 = vpop.eup %1651 }
 0x44c   : > { %v1654_v37 = vpop.eup %1653 }
 0x44d   : > { %v1656_v44 = vpop.eup %1655 }
 0x44e   : > { %v1658_v45 = vpop.eup %1657 }
 0x472   : > { %v900_v23 = vpop.f32.mrb[12].mxu0 }
 0x473   : > { %v1482_v25 = vpop.f32.mrb[13].mxu0  ;;  %v909_v29 = vmul.f32 %v1648_v24, %v900_v23 }
 0x474   : > { %v903_v27 = vpop.f32.mrb[14].mxu0 }
 0x475   : > { %v910_v30 = vmul.f32 %v1650_v26, %v903_v27  ;;  %v1483_v31 = vpop.f32.mrb[15].mxu0 }
 0x477   : > { %v911_v33 = vpack.c.bf16 %v910_v30, %v909_v29 }
 0x479   : > { %1157 = vrot.lane.b32.xlu0 %v911_v33, %s1842_s20 }
 0x47a   : > { %v1021_v34 = vpop.f32.mrb[16].mxu0 }
 0x47b   : > { %v1494_v36 = vpop.f32.mrb[17].mxu0  ;;  %v1030_v39 = vmul.f32 %v1652_v35, %v1021_v34 }
 0x47c   : > { %v1024_v38 = vpop.f32.mrb[18].mxu0 }
 0x47d   : > { %v1031_v40 = vmul.f32 %v1654_v37, %v1024_v38  ;;  %v1495_v41 = vpop.f32.mrb[19].mxu0 }
 0x47f   : > { %v1032_v42 = vpack.c.bf16 %v1031_v40, %v1030_v39 }
 0x481   : > { %1160 = vrot.lane.b32.xlu1 %v1032_v42, %s1843_s28 }
 0x482   : > { %v1144_v43 = vpop.f32.mrb[20].mxu0 }
 0x483   : > { %v1506_v0 = vpop.f32.mrb[21].mxu0  ;;  %v1153_v47 = vmul.f32 %v1656_v44, %v1144_v43 }
 0x484   : > { %v1147_v46 = vpop.f32.mrb[22].mxu0 }
 0x485   : > { %v1154_v48 = vmul.f32 %v1658_v45, %v1147_v46  ;;  %v1507_v49 = vpop.f32.mrb[23].mxu0 }
 0x487   : > { %v1155_v50 = vpack.c.bf16 %v1154_v48, %v1153_v47 }
 0x489   : > { %1163 = vrot.lane.b32.xlu1 %v1155_v50, %s1844_s13 }
 0x4eb   : > { %v1158_v51 = vpop.permute.xlu0 %1157 }
 0x4ec   : > { %v1167_v53 = vsel %vm668_vm4, %v786_v22, %v1158_v51 }
 0x4f3   : > { %v1161_v52 = vpop.permute.xlu1 %1160 }
 0x4f4   : > { %v1169_v54 = vsel %vm517_vm2, %v1167_v53, %v1161_v52 }
 0x4fb   : > { %v1164_v55 = vpop.permute.xlu1 %1163 }
 0x4fc   : > { %v1172_v56 = vsel %vm1170_vm5, %v1169_v54, %v1164_v55 }
 0x4fd   : > { %1513 = vmatmul.mubr.msk.bf16.vlgmr.msra.gmra.mrb[20].mxu1 %vm456_vm1, %v1172_v56 }
 0x5d0   : > { %v1232_v58 = vpop.f32.mrb[20].mxu1 }
 0x5d1   : > { %v1233_v59 = vadd.f32 %v1399_v57, %v1232_v58  ;;  %v1514_v60 = vpop.f32.mrb[21].mxu1 }
 0x5d2   : > { %v1235_v61 = vpop.f32.mrb[22].mxu1 }
 0x5d3   : > { %1239 = vst.msk [vmem:[%s381_s22] sm:$0xff] %vm456_vm1, %v1233_v59  ;;  %v1236_v62 = vadd.f32 %v1399_v57, %v1235_v61  ;;  %v1515_v63 = vpop.f32.mrb[23].mxu1 }
 0x5d5   : > { %1240 = vst.msk [vmem:[%s381_s22 + $0x8] sm:$0xff] %vm456_vm1, %v1236_v62 }
 0x5d6   : > { %1756 = shalt.err (!%p1753_p6)
}
 0x5d7   : > { %s1757_s28 = scalar_lea.hbm %s2174_s30, 256  ;;  %s1761_s29 = scalar_lea.hbm %s2233_s9, 512 }
 0x5d8   : > { %p1758_p7 = scmp.ne.s32.totalorder %s2174_s30, %s1757_s28  ;;  %p1762_p4 = scmp.lt.u32.totalorder %s2174_s30, %s2233_s9 }
 0x5d9   : > { %p1763_p1 = scmp.lt.u32.totalorder %s1761_s29, %s1757_s28  ;;  %p1765_p13 = scmp.lt.u32.totalorder %s1757_s28, %s2174_s30 }
 0x5da   : > { %p1759_p9 = pnand %p1758_p7, %p2259_p10 }
 0x5db   : > { %p1764_p8 = por %p1763_p1, %p1762_p4 }
 0x5dc   : > { %p1760_p12 = pneg %p1759_p9 }
 0x5dd   : > { %p1766_p11 = por %p1765_p13, %p1764_p8 }
 0x5df   : > { %p1767_p0 = pnand %p1766_p11, %p1760_p12 }
 0x5e1   : > { %1770 = shalt.err (!%p1767_p0)
}
 0x5e2   : > { %s1846_s22 = smov 128  }
 0x5e3   : > { %1529 = dma.vmem_to_hbm [thread:$0]  (%p2259_p10), %s2168_s23, 256, %s2174_s30, %s2177_s12, %s1846_s22, %s1846_s22, %s1842_s20  }
 0x5e4 PF: > { %s2260_s27 = sld [smem:[#allocation14_spill]]  ;;  %s2261_s25 = sld [smem:[#allocation18_spill]] }
 0x5e5   : > { %p1551_p2 = scmp.ge.s32.totalorder %s1829_s14, 2 }
 0x5ea   : > { %s1272_s16 = sand.u32 1, %s2260_s27   ;;  %p2262_p3 = scmp.ne.s32.totalorder %s2261_s25, 0 }
 0x5eb   : > { %s1273_s24 = scalar_lea.sflag [#allocation6], %s1272_s16 }
 0x5ec   : > { %p1542_p5 = pnand %p1551_p2, %p2262_p3 }
 0x5ee   : > { %1804 = dma.done.wait (!%p1542_p5), %s1273_s24, 256  }
 0x5ef   : > { %1806 = vsyncadd (!%p1542_p5), %s1273_s24, 4294967040  ;;  %s24_s14 = sadd.s32 1, %s1829_s14   ;;  %s2263_s19 = sld [smem:[#allocation15_spill]] }
 0x5f0   : > { %p21_p6 = scmp.ge.s32.totalorder %s24_s14, 4   ;;  %s2264_s11 = sld [smem:[#allocation19_spill]] }
 0x5f1   : > { %s2265_s12 = sld [smem:[#allocation16_spill]]  ;;  %s2266_s13 = sld [smem:[#allocation17_spill]] }
 0x5f2   : > { %s2267_s30 = smov %s1813_s10  ;;  %23 = sbr.rel (!%p21_p6) target bundleno = 6 (0x6), region = 109 }
 0x5f5   : > { %s2268_s10 = smov %s2263_s19 }
 0x5f9   :  { %1278 = vsyncpa [#allocation5], 1 }
 0x5fa   :  { %1280 = vsyncpa [#allocation5 + $0x1], 1 }
 0x5fb   :  { %1281 = vsyncpa [#allocation8], 1 }
 0x5fc   :  { %1282 = vsyncpa [#allocation6], 1 }
 0x5fd   :  { %1284 = vsyncpa [#allocation6 + $0x1], 1 }

</bundles_post_ra>
